<compile_context>
chip_gen: v5e
topology: v5e:2x2
jax: 0.10.0
libtpu: 0.0.40
codegen_flags: <defaults>
</compile_context>

<pallas_src>
import functools

import jax
import jax.numpy as jnp
from jax import lax
from jax.experimental import pallas as pl
from jax.experimental.pallas import tpu as pltpu

# ------------------------- configuration (small, synthetic) -------------------------
NUM_HETEROS = 3      # C
NUM_TS      = 10     # N (real node / time-series axis)
TIME_LAGS   = 8      # T
NUM_BLOCKS  = 2
K_HOPS      = 2
EMB_DIM     = 16
TOP_K       = 4
ALPHA       = 3.0
BATCH       = 2
S_SLOTS     = NUM_BLOCKS + 2          # sub-channels per hetero group in outs_label
BN_EPS      = 1e-5
NP          = 128                     # lane-padded node axis
OUT_ROWS    = 8                       # fc_out channel rows padded to a full sublane tile

# ---- flat per-channel scalar-parameter packing (static layout, 1-D SMEM) ------------
#   flat[0]                  : beta
#   flat[1 + c*PER_CH + ...] : channel-c scalars
#       +0..1                : projection w, b
#       +O_TCONV + i*8 + k   : temporal conv (block i): wf0,wf1,wf2,bf,wg0,wg1,wg2,bg
#       +O_HOP + i*(K+1) + j : mix-hop weights (block i)
#       +O_DEC + j           : fc_decode (Wd[S], bd, bn1 s/sh, a1, c1, bn2 s/sh, a2, c2)
O_TCONV   = 2
O_HOP     = O_TCONV + NUM_BLOCKS * 8
O_DEC     = O_HOP + NUM_BLOCKS * (K_HOPS + 1)
PER_CH    = O_DEC + S_SLOTS + 9
N_SCALARS = 1 + NUM_HETEROS * PER_CH


def _leaky(x, slope=0.5):
    # negative_slope=0.5 matches the reference module's nn.LeakyReLU(negative_slope=0.5)
    return jnp.where(x >= 0, x, slope * x)


# =====================================================================================
# Fused Pallas kernel: one hetero channel (all batches) per grid step
# =====================================================================================
def _mtgnn_channel_kernel(sc_ref,    # (N_SCALARS,) f32 SMEM
                          x_ref,     # (1, B*T, NP)  f32  VMEM  (this channel, all batches)
                          a_ref,     # (1, NP, NP)   bf16 VMEM  (this channel's normalized A)
                          fcw_ref,   # (1, B*8, B*T) f32  VMEM  (batch-block-diag fc_out W)
                          o_ref):    # (1, B*8, NP)  f32  VMEM  (per-channel fc_out partial)
    T = TIME_LAGS
    M = BATCH * TIME_LAGS
    c = pl.program_id(0)
    base = 1 + c * PER_CH
    beta = sc_ref[0]

    # ---- prologue: iotas / masks shared by every block (hoisted, built once) ----------
    trow = lax.broadcasted_iota(jnp.int32, (M, NP), 0) % T     # time index within a batch
    lane = lax.broadcasted_iota(jnp.int32, (M, NP), 1)
    not_first = trow != 0
    not_last = trow != T - 1

    x = x_ref[0]                                               # (B*T, NP)

    # ---- projection: grouped 1x1 conv == per-channel affine ---------------------------
    x = sc_ref[base + 0] * x + sc_ref[base + 1]
    # Zero padded lanes so downstream bias adds never leak into real columns (also
    # guaranteed by A's zero padded rows; this makes it robust either way).
    x = jnp.where(lane < NUM_TS, x, 0.0)

    A = a_ref[0]                                               # (NP, NP) bf16

    slots = [x]                                                # outs_label slots, this channel
    out = x
    for i in range(NUM_BLOCKS):                                # blocks fully unrolled
        h_in = out
        # gated temporal 3x1 conv (zero padded in time), one filter per channel.
        # roll is over the fused (batch, time) axis; masks stop cross-batch leakage.
        x_prev = jnp.where(not_first, pltpu.roll(h_in, shift=1, axis=0), 0.0)
        x_next = jnp.where(not_last, pltpu.roll(h_in, shift=M - 1, axis=0), 0.0)
        tb = base + O_TCONV + i * 8
        filt = (sc_ref[tb + 0] * x_prev + sc_ref[tb + 1] * h_in
                + sc_ref[tb + 2] * x_next + sc_ref[tb + 3])
        gate = (sc_ref[tb + 4] * x_prev + sc_ref[tb + 5] * h_in
                + sc_ref[tb + 6] * x_next + sc_ref[tb + 7])
        tc_out = jnp.tanh(filt) * jax.nn.sigmoid(gate)

        # mix-hop propagation: h_j = beta*h0 + (1-beta) * h_{j-1} @ A   (bf16 MXU dots,
        # single (B*T, NP) x (NP, NP) matmul per hop for all batches).
        # TODO(synk): A is the stationary RHS of all hops; explicit matmul_push_rhs could pin
        #             it in MXU weight regs, skipped here for lowering safety.
        hb = base + O_HOP + i * (K_HOPS + 1)
        h0 = tc_out
        h = tc_out
        acc = sc_ref[hb + 0] * h0
        for j in range(1, K_HOPS + 1):
            h = beta * h0 + (1.0 - beta) * jnp.dot(
                h.astype(jnp.bfloat16), A, preferred_element_type=jnp.float32)
            acc = acc + sc_ref[hb + j] * h
        out = acc + h_in                                       # residual
        slots.append(tc_out)
    slots.append(out)

    # ---- fc_decode: grouped 1x1 conv (S->1) + BN + LeakyReLU + ResidualAdd ------------
    db = base + O_DEC
    y = sc_ref[db + 0] * slots[0]
    for j in range(1, S_SLOTS):
        y = y + sc_ref[db + j] * slots[j]
    y = y + sc_ref[db + S_SLOTS]                               # conv bias
    y = y * sc_ref[db + S_SLOTS + 1] + sc_ref[db + S_SLOTS + 2]   # BN1 (folded, eval mode)
    y = _leaky(y)
    r = sc_ref[db + S_SLOTS + 3] * y + sc_ref[db + S_SLOTS + 4]   # grouped conv a1, c1
    r = r * sc_ref[db + S_SLOTS + 5] + sc_ref[db + S_SLOTS + 6]   # BN2 (folded)
    r = _leaky(r)
    r = sc_ref[db + S_SLOTS + 7] * r + sc_ref[db + S_SLOTS + 8]   # grouped conv a2, c2
    decoded = _leaky(y + r)                                    # (B*T, NP)

    # ---- fc_out partial: batch-block-diag W_c (B*8, B*T) @ decoded (B*T, NP) ----------
    # Full (8,128)-aligned result tile -> unmasked store; channel sum + bias + tanh is a
    # tiny plain-JAX epilogue in the wrapper.
    o_ref[0] = jnp.dot(fcw_ref[0], decoded, preferred_element_type=jnp.float32)


# =====================================================================================
# Plain-JAX glue: graph learning layer (tiny matmuls + top_k), packing, wrapper
# =====================================================================================
def adj_constructor(E1, E2, Th1, Tb1, Th2, Tb2, ts_idx, alpha, top_k):
    e1, e2 = E1[ts_idx], E2[ts_idx]
    m1 = jnp.tanh(alpha * (e1 @ Th1 + Tb1))
    m2 = jnp.tanh(alpha * (e2 @ Th2 + Tb2))
    a = jax.nn.relu(jnp.tanh(alpha * (m1 @ m2.T - m2 @ m1.T)))
    vals, _ = lax.top_k(a, top_k)                      # deterministic top-k (no noise)
    thresh = vals[:, top_k - 1][:, None]
    # NOTE: `>= thresh` keeps tied values beyond k; index-based masking may differ on ties.
    return jnp.where(a >= thresh, a, 0.0)


def normalize_adj(a):
    a = a + jnp.eye(a.shape[-1], dtype=a.dtype)
    return a / jnp.sum(a, axis=-1, keepdims=True)


def _pack_scalars(params, beta):
    per_ch = []
    for c in range(NUM_HETEROS):
        parts = [params['proj'][c].reshape(-1)]
        for i in range(NUM_BLOCKS):
            parts.append(params['blocks'][i]['tconv'][c].reshape(-1))
        for i in range(NUM_BLOCKS):
            parts.append(params['blocks'][i]['hop_w'][c].reshape(-1))
        parts.append(params['decode'][c].reshape(-1))
        per_ch.append(jnp.concatenate(parts))
    flat = jnp.concatenate(
        [jnp.reshape(jnp.asarray(beta, jnp.float32), (1,))] + per_ch).astype(jnp.float32)
    assert flat.shape[0] == N_SCALARS
    return flat


def mtgnn_forward(params, x_input, mask, beta):
    del mask                                           # unused, same as reference forward
    bs, C, T, N = x_input.shape

    # graph learning (vmapped over hetero channels), then row-normalize + pad + bf16.
    # Zero padded ROWS (>= N) of A are what keep padded-lane garbage out of real columns.
    ts_idx = jnp.arange(N)
    adj_fn = lambda E1, E2, Th1, Tb1, Th2, Tb2: adj_constructor(
        E1, E2, Th1, Tb1, Th2, Tb2, ts_idx, ALPHA, TOP_K)
    a_hat = normalize_adj(jax.vmap(adj_fn)(*params['gen_adj']))        # (C, N, N)
    a_pad = (jnp.zeros((C, NP, NP), jnp.float32).at[:, :N, :N].set(a_hat)
             ).astype(jnp.bfloat16)

    # lane-pad the input and fold batch into the matmul M axis: (C, B*T, NP)
    x_pad = jnp.zeros((bs, C, T, NP), jnp.float32).at[..., :N].set(x_input)
    x_cbt = jnp.transpose(x_pad, (1, 0, 2, 3)).reshape(C, bs * T, NP)

    scalars = _pack_scalars(params, beta)

    # fc_out weights per INPUT channel, C_out padded to 8 rows, block-diagonal over batch:
    # fcw_blk[c, b*8+o, b*T+t] = fc_out_w[o, c, t]
    fcw_pad = jnp.zeros((C, OUT_ROWS, T), jnp.float32).at[:, :C, :].set(
        jnp.transpose(params['fc_out_w'], (1, 0, 2)))
    eye_b = jnp.eye(bs, dtype=jnp.float32)
    fcw_blk = (eye_b[None, :, None, :, None]
               * fcw_pad[:, None, :, None, :]).reshape(C, bs * OUT_ROWS, bs * T)

    partial = pl.pallas_call(
        _mtgnn_channel_kernel,
        out_shape=jax.ShapeDtypeStruct((C, bs * OUT_ROWS, NP), jnp.float32),
        grid=(C,),
        in_specs=[pl.BlockSpec(memory_space=pltpu.MemorySpace.SMEM),          # flat scalars
                  pl.BlockSpec((1, bs * T, NP), lambda c: (c, 0, 0)),         # x (channel c)
                  pl.BlockSpec((1, NP, NP), lambda c: (c, 0, 0)),             # A (channel c)
                  pl.BlockSpec((1, bs * OUT_ROWS, bs * T), lambda c: (c, 0, 0))],  # fc_out W
        out_specs=pl.BlockSpec((1, bs * OUT_ROWS, NP), lambda c: (c, 0, 0)),
        compiler_params=pltpu.CompilerParams(dimension_semantics=("parallel",)),
    )(scalars, x_cbt, a_pad, fcw_blk)

    # tiny epilogue: sum channel partials, add bias, tanh, slice back to (bs, C, 1, N)
    fcb_pad = jnp.zeros((OUT_ROWS, 1), jnp.float32).at[:C, :].set(params['fc_out_b'])
    preds_pad = jnp.tanh(jnp.sum(partial, axis=0).reshape(bs, OUT_ROWS, NP)
                         + fcb_pad[None])
    preds = preds_pad[:, :C, :N].reshape(bs, C, 1, N)
    return {'preds': preds, 'outs_label': preds, 'outs_mask': None,
            'kl_loss': None, 'adj_mat': None}


def init_params(key):
    C, N, T, D, S = NUM_HETEROS, NUM_TS, TIME_LAGS, EMB_DIM, S_SLOTS
    keys = iter(jax.random.split(key, 64))
    nrm = lambda shp, s=0.1: s * jax.random.normal(next(keys), shp, jnp.float32)

    proj = jnp.concatenate([1.0 + nrm((C, 1)), nrm((C, 1))], axis=1)        # (C,2) w,b

    gen_adj = (nrm((C, N, D), 0.5), nrm((C, N, D), 0.5),
               nrm((C, D, D), 0.3), nrm((C, D), 0.1),
               nrm((C, D, D), 0.3), nrm((C, D), 0.1))

    blocks = []
    for _ in range(NUM_BLOCKS):
        blocks.append({'tconv': nrm((C, 8), 0.3),                           # wf0..2,bf,wg0..2,bg
                       'hop_w': nrm((C, K_HOPS + 1), 0.5)})

    # fc_decode packed params (eval-mode BN folded to scale/shift)
    bn_scale = jnp.full((C, 1), 1.0 / jnp.sqrt(1.0 + BN_EPS), jnp.float32)  # gamma=1,var=1
    bn_shift = jnp.zeros((C, 1), jnp.float32)                               # beta=0,mean=0
    decode = jnp.concatenate(
        [nrm((C, S), 0.3), nrm((C, 1), 0.1),          # Wd, bd
         bn_scale, bn_shift,                          # BN1
         1.0 + nrm((C, 1)), nrm((C, 1)),              # grouped conv a1, c1
         bn_scale, bn_shift,                          # BN2
         1.0 + nrm((C, 1)), nrm((C, 1))], axis=1)     # grouped conv a2, c2   -> (C, S+9)

    fc_out_w = nrm((C, C, T), 0.2)
    fc_out_b = nrm((C, 1), 0.1)
    return {'proj': proj, 'gen_adj': gen_adj, 'blocks': blocks,
            'decode': decode, 'fc_out_w': fc_out_w, 'fc_out_b': fc_out_b}


if __name__ == "__main__":
    key = jax.random.PRNGKey(0)
    kp, kx, km = jax.random.split(key, 3)
    params = init_params(kp)
    x_input = jax.random.normal(kx, (BATCH, NUM_HETEROS, TIME_LAGS, NUM_TS), jnp.float32)
    mask = (jax.random.uniform(km, (BATCH, NUM_HETEROS, TIME_LAGS, NUM_TS)) > 0.1
            ).astype(jnp.float32)
    beta = jnp.float32(0.05)

    fwd = jax.jit(functools.partial(mtgnn_forward, params))
    out = fwd(x_input, mask, beta)
    jax.block_until_ready(out['preds'])

    assert out['preds'].shape == (BATCH, NUM_HETEROS, 1, NUM_TS)
    assert bool(jnp.all(jnp.isfinite(out['preds'])))
    print("KERNEL_OK")
</pallas_src>

<mosaic_0001>
module attributes {stable_mosaic.version = 11 : i64} {
  func.func @_mtgnn_channel_kernel(%arg0: i32, %arg1: memref<112xf32, #tpu.memory_space<smem>>, %arg2: memref<1x16x128xf32, #tpu.memory_space<vmem>>, %arg3: memref<1x128x128xbf16, #tpu.memory_space<vmem>>, %arg4: memref<1x16x16xf32, #tpu.memory_space<vmem>>, %arg5: memref<1x16x128xf32, #tpu.memory_space<vmem>>) attributes {dimension_semantics = [#tpu.dimension_semantics<parallel>], iteration_bounds = array<i64: 3>, scalar_prefetch = 0 : i64, scratch_operands = 0 : i64, tpu.core_type = #tpu.core_type<tc>, window_params = [{transform_indices = @transform_0, window_bounds = array<i64: 112>}, {transform_indices = @transform_1, window_bounds = array<i64: 1, 16, 128>}, {transform_indices = @transform_2, window_bounds = array<i64: 1, 128, 128>}, {transform_indices = @transform_3, window_bounds = array<i64: 1, 16, 16>}, {transform_indices = @transform_4, window_bounds = array<i64: 1, 16, 128>}]} {
    %c37_i32 = arith.constant 37 : i32
    %0 = arith.muli %arg0, %c37_i32 : i32
    %c1_i32 = arith.constant 1 : i32
    %1 = arith.addi %c1_i32, %0 : i32
    %c0 = arith.constant 0 : index
    %2 = memref.load %arg1[%c0] : memref<112xf32, #tpu.memory_space<smem>>
    %3 = tpu.iota {dimensions = array<i32: 0>} : vector<16x128xi32>
    %c8_i32 = arith.constant 8 : i32
    %c0_i32 = arith.constant 0 : i32
    %4 = arith.cmpi eq, %c8_i32, %c0_i32 : i32
    %c1_i32_0 = arith.constant 1 : i32
    %5 = arith.select %4, %c1_i32_0, %c8_i32 : i32
    %6 = vector.broadcast %5 : i32 to vector<16x128xi32>
    %7 = arith.remsi %3, %6 : vector<16x128xi32>
    %c0_i32_1 = arith.constant 0 : i32
    %8 = vector.broadcast %c0_i32_1 : i32 to vector<16x128xi32>
    %9 = arith.cmpi ne, %7, %8 : vector<16x128xi32>
    %c0_i32_2 = arith.constant 0 : i32
    %10 = vector.broadcast %c0_i32_2 : i32 to vector<16x128xi32>
    %11 = arith.cmpi slt, %7, %10 : vector<16x128xi32>
    %c0_i32_3 = arith.constant 0 : i32
    %12 = arith.cmpi slt, %5, %c0_i32_3 : i32
    %13 = vector.broadcast %12 : i1 to vector<16x128xi1>
    %14 = vector.broadcast %13 : vector<16x128xi1> to vector<16x128xi1>
    %15 = arith.xori %11, %14 : vector<16x128xi1>
    %16 = arith.andi %15, %9 : vector<16x128xi1>
    %17 = vector.broadcast %5 : i32 to vector<16x128xi32>
    %18 = arith.addi %7, %17 : vector<16x128xi32>
    %19 = arith.select %16, %18, %7 : vector<16x128xi1>, vector<16x128xi32>
    %20 = tpu.iota {dimensions = array<i32: 1>} : vector<16x128xi32>
    %c0_i32_4 = arith.constant 0 : i32
    %21 = vector.broadcast %c0_i32_4 : i32 to vector<16x128xi32>
    %22 = arith.cmpi ne, %19, %21 : vector<16x128xi32>
    %c7_i32 = arith.constant 7 : i32
    %23 = vector.broadcast %c7_i32 : i32 to vector<16x128xi32>
    %24 = arith.cmpi ne, %19, %23 : vector<16x128xi32>
    %c0_5 = arith.constant 0 : index
    %c0_6 = arith.constant 0 : index
    %c0_7 = arith.constant 0 : index
    %25 = vector.load %arg2[%c0_5, %c0_6, %c0_7] : memref<1x16x128xf32, #tpu.memory_space<vmem>>, vector<1x16x128xf32>
    %26 = vector.shape_cast %25 : vector<1x16x128xf32> to vector<16x128xf32>
    %c0_i32_8 = arith.constant 0 : i32
    %27 = arith.addi %1, %c0_i32_8 : i32
    %28 = arith.index_cast %27 : i32 to index
    %29 = memref.load %arg1[%28] : memref<112xf32, #tpu.memory_space<smem>>
    %30 = vector.broadcast %29 : f32 to vector<16x128xf32>
    %31 = arith.mulf %30, %26 : vector<16x128xf32>
    %c1_i32_9 = arith.constant 1 : i32
    %32 = arith.addi %1, %c1_i32_9 : i32
    %33 = arith.index_cast %32 : i32 to index
    %34 = memref.load %arg1[%33] : memref<112xf32, #tpu.memory_space<smem>>
    %35 = vector.broadcast %34 : f32 to vector<16x128xf32>
    %36 = arith.addf %31, %35 : vector<16x128xf32>
    %c10_i32 = arith.constant 10 : i32
    %37 = vector.broadcast %c10_i32 : i32 to vector<16x128xi32>
    %38 = arith.cmpi slt, %20, %37 : vector<16x128xi32>
    %cst = arith.constant 0.000000e+00 : f32
    %39 = vector.broadcast %cst : f32 to vector<16x128xf32>
    %40 = arith.select %38, %36, %39 : vector<16x128xi1>, vector<16x128xf32>
    %c0_10 = arith.constant 0 : index
    %c0_11 = arith.constant 0 : index
    %c0_12 = arith.constant 0 : index
    %41 = vector.load %arg3[%c0_10, %c0_11, %c0_12] : memref<1x128x128xbf16, #tpu.memory_space<vmem>>, vector<1x128x128xbf16>
    %42 = vector.shape_cast %41 : vector<1x128x128xbf16> to vector<128x128xbf16>
    %c1_i32_13 = arith.constant 1 : i32
    %43 = tpu.dynamic_rotate %40 by %c1_i32_13 dim 0 : vector<16x128xf32>, i32 -> vector<16x128xf32>
    %cst_14 = arith.constant 0.000000e+00 : f32
    %44 = vector.broadcast %cst_14 : f32 to vector<16x128xf32>
    %45 = arith.select %22, %43, %44 : vector<16x128xi1>, vector<16x128xf32>
    %c15_i32 = arith.constant 15 : i32
    %46 = tpu.dynamic_rotate %40 by %c15_i32 dim 0 : vector<16x128xf32>, i32 -> vector<16x128xf32>
    %cst_15 = arith.constant 0.000000e+00 : f32
    %47 = vector.broadcast %cst_15 : f32 to vector<16x128xf32>
    %48 = arith.select %24, %46, %47 : vector<16x128xi1>, vector<16x128xf32>
    %c2_i32 = arith.constant 2 : i32
    %49 = arith.addi %1, %c2_i32 : i32
    %c0_i32_16 = arith.constant 0 : i32
    %50 = arith.addi %49, %c0_i32_16 : i32
    %c0_i32_17 = arith.constant 0 : i32
    %51 = arith.addi %50, %c0_i32_17 : i32
    %52 = arith.index_cast %51 : i32 to index
    %53 = memref.load %arg1[%52] : memref<112xf32, #tpu.memory_space<smem>>
    %54 = vector.broadcast %53 : f32 to vector<16x128xf32>
    %55 = arith.mulf %54, %45 : vector<16x128xf32>
    %c1_i32_18 = arith.constant 1 : i32
    %56 = arith.addi %50, %c1_i32_18 : i32
    %57 = arith.index_cast %56 : i32 to index
    %58 = memref.load %arg1[%57] : memref<112xf32, #tpu.memory_space<smem>>
    %59 = vector.broadcast %58 : f32 to vector<16x128xf32>
    %60 = arith.mulf %59, %40 : vector<16x128xf32>
    %61 = arith.addf %55, %60 : vector<16x128xf32>
    %c2_i32_19 = arith.constant 2 : i32
    %62 = arith.addi %50, %c2_i32_19 : i32
    %63 = arith.index_cast %62 : i32 to index
    %64 = memref.load %arg1[%63] : memref<112xf32, #tpu.memory_space<smem>>
    %65 = vector.broadcast %64 : f32 to vector<16x128xf32>
    %66 = arith.mulf %65, %48 : vector<16x128xf32>
    %67 = arith.addf %61, %66 : vector<16x128xf32>
    %c3_i32 = arith.constant 3 : i32
    %68 = arith.addi %50, %c3_i32 : i32
    %69 = arith.index_cast %68 : i32 to index
    %70 = memref.load %arg1[%69] : memref<112xf32, #tpu.memory_space<smem>>
    %71 = vector.broadcast %70 : f32 to vector<16x128xf32>
    %72 = arith.addf %67, %71 : vector<16x128xf32>
    %c4_i32 = arith.constant 4 : i32
    %73 = arith.addi %50, %c4_i32 : i32
    %74 = arith.index_cast %73 : i32 to index
    %75 = memref.load %arg1[%74] : memref<112xf32, #tpu.memory_space<smem>>
    %76 = vector.broadcast %75 : f32 to vector<16x128xf32>
    %77 = arith.mulf %76, %45 : vector<16x128xf32>
    %c5_i32 = arith.constant 5 : i32
    %78 = arith.addi %50, %c5_i32 : i32
    %79 = arith.index_cast %78 : i32 to index
    %80 = memref.load %arg1[%79] : memref<112xf32, #tpu.memory_space<smem>>
    %81 = vector.broadcast %80 : f32 to vector<16x128xf32>
    %82 = arith.mulf %81, %40 : vector<16x128xf32>
    %83 = arith.addf %77, %82 : vector<16x128xf32>
    %c6_i32 = arith.constant 6 : i32
    %84 = arith.addi %50, %c6_i32 : i32
    %85 = arith.index_cast %84 : i32 to index
    %86 = memref.load %arg1[%85] : memref<112xf32, #tpu.memory_space<smem>>
    %87 = vector.broadcast %86 : f32 to vector<16x128xf32>
    %88 = arith.mulf %87, %48 : vector<16x128xf32>
    %89 = arith.addf %83, %88 : vector<16x128xf32>
    %c7_i32_20 = arith.constant 7 : i32
    %90 = arith.addi %50, %c7_i32_20 : i32
    %91 = arith.index_cast %90 : i32 to index
    %92 = memref.load %arg1[%91] : memref<112xf32, #tpu.memory_space<smem>>
    %93 = vector.broadcast %92 : f32 to vector<16x128xf32>
    %94 = arith.addf %89, %93 : vector<16x128xf32>
    %95 = math.tanh %72 : vector<16x128xf32>
    %96 = arith.negf %94 : vector<16x128xf32>
    %97 = math.exp %96 : vector<16x128xf32>
    %cst_21 = arith.constant 1.000000e+00 : f32
    %98 = vector.broadcast %cst_21 : f32 to vector<16x128xf32>
    %99 = arith.addf %98, %97 : vector<16x128xf32>
    %100 = arith.divf %98, %99 : vector<16x128xf32>
    %101 = arith.mulf %95, %100 : vector<16x128xf32>
    %c18_i32 = arith.constant 18 : i32
    %102 = arith.addi %1, %c18_i32 : i32
    %c0_i32_22 = arith.constant 0 : i32
    %103 = arith.addi %102, %c0_i32_22 : i32
    %c0_i32_23 = arith.constant 0 : i32
    %104 = arith.addi %103, %c0_i32_23 : i32
    %105 = arith.index_cast %104 : i32 to index
    %106 = memref.load %arg1[%105] : memref<112xf32, #tpu.memory_space<smem>>
    %107 = vector.broadcast %106 : f32 to vector<16x128xf32>
    %108 = arith.mulf %107, %101 : vector<16x128xf32>
    %109 = vector.broadcast %2 : f32 to vector<16x128xf32>
    %110 = arith.mulf %109, %101 : vector<16x128xf32>
    %cst_24 = arith.constant 1.000000e+00 : f32
    %111 = arith.subf %cst_24, %2 : f32
    %112 = arith.truncf %101 : vector<16x128xf32> to vector<16x128xbf16>
    %cst_25 = arith.constant dense<0.000000e+00> : vector<16x128xf32>
    %113 = tpu.matmul %112, %42, %cst_25 {dimension_numbers = #tpu.dot_dimension_numbers<[1], [0], [0], [1], [0, 0, 1, 1], [], []>} : vector<16x128xbf16>, vector<128x128xbf16>, vector<16x128xf32> -> vector<16x128xf32>
    %114 = vector.broadcast %111 : f32 to vector<16x128xf32>
    %115 = arith.mulf %114, %113 : vector<16x128xf32>
    %116 = arith.addf %110, %115 : vector<16x128xf32>
    %c1_i32_26 = arith.constant 1 : i32
    %117 = arith.addi %103, %c1_i32_26 : i32
    %118 = arith.index_cast %117 : i32 to index
    %119 = memref.load %arg1[%118] : memref<112xf32, #tpu.memory_space<smem>>
    %120 = vector.broadcast %119 : f32 to vector<16x128xf32>
    %121 = arith.mulf %120, %116 : vector<16x128xf32>
    %122 = arith.addf %108, %121 : vector<16x128xf32>
    %123 = vector.broadcast %2 : f32 to vector<16x128xf32>
    %124 = arith.mulf %123, %101 : vector<16x128xf32>
    %cst_27 = arith.constant 1.000000e+00 : f32
    %125 = arith.subf %cst_27, %2 : f32
    %126 = arith.truncf %116 : vector<16x128xf32> to vector<16x128xbf16>
    %cst_28 = arith.constant dense<0.000000e+00> : vector<16x128xf32>
    %127 = tpu.matmul %126, %42, %cst_28 {dimension_numbers = #tpu.dot_dimension_numbers<[1], [0], [0], [1], [0, 0, 1, 1], [], []>} : vector<16x128xbf16>, vector<128x128xbf16>, vector<16x128xf32> -> vector<16x128xf32>
    %128 = vector.broadcast %125 : f32 to vector<16x128xf32>
    %129 = arith.mulf %128, %127 : vector<16x128xf32>
    %130 = arith.addf %124, %129 : vector<16x128xf32>
    %c2_i32_29 = arith.constant 2 : i32
    %131 = arith.addi %103, %c2_i32_29 : i32
    %132 = arith.index_cast %131 : i32 to index
    %133 = memref.load %arg1[%132] : memref<112xf32, #tpu.memory_space<smem>>
    %134 = vector.broadcast %133 : f32 to vector<16x128xf32>
    %135 = arith.mulf %134, %130 : vector<16x128xf32>
    %136 = arith.addf %122, %135 : vector<16x128xf32>
    %137 = arith.addf %136, %40 : vector<16x128xf32>
    %c1_i32_30 = arith.constant 1 : i32
    %138 = tpu.dynamic_rotate %137 by %c1_i32_30 dim 0 : vector<16x128xf32>, i32 -> vector<16x128xf32>
    %cst_31 = arith.constant 0.000000e+00 : f32
    %139 = vector.broadcast %cst_31 : f32 to vector<16x128xf32>
    %140 = arith.select %22, %138, %139 : vector<16x128xi1>, vector<16x128xf32>
    %c15_i32_32 = arith.constant 15 : i32
    %141 = tpu.dynamic_rotate %137 by %c15_i32_32 dim 0 : vector<16x128xf32>, i32 -> vector<16x128xf32>
    %cst_33 = arith.constant 0.000000e+00 : f32
    %142 = vector.broadcast %cst_33 : f32 to vector<16x128xf32>
    %143 = arith.select %24, %141, %142 : vector<16x128xi1>, vector<16x128xf32>
    %c2_i32_34 = arith.constant 2 : i32
    %144 = arith.addi %1, %c2_i32_34 : i32
    %c8_i32_35 = arith.constant 8 : i32
    %145 = arith.addi %144, %c8_i32_35 : i32
    %c0_i32_36 = arith.constant 0 : i32
    %146 = arith.addi %145, %c0_i32_36 : i32
    %147 = arith.index_cast %146 : i32 to index
    %148 = memref.load %arg1[%147] : memref<112xf32, #tpu.memory_space<smem>>
    %149 = vector.broadcast %148 : f32 to vector<16x128xf32>
    %150 = arith.mulf %149, %140 : vector<16x128xf32>
    %c1_i32_37 = arith.constant 1 : i32
    %151 = arith.addi %145, %c1_i32_37 : i32
    %152 = arith.index_cast %151 : i32 to index
    %153 = memref.load %arg1[%152] : memref<112xf32, #tpu.memory_space<smem>>
    %154 = vector.broadcast %153 : f32 to vector<16x128xf32>
    %155 = arith.mulf %154, %137 : vector<16x128xf32>
    %156 = arith.addf %150, %155 : vector<16x128xf32>
    %c2_i32_38 = arith.constant 2 : i32
    %157 = arith.addi %145, %c2_i32_38 : i32
    %158 = arith.index_cast %157 : i32 to index
    %159 = memref.load %arg1[%158] : memref<112xf32, #tpu.memory_space<smem>>
    %160 = vector.broadcast %159 : f32 to vector<16x128xf32>
    %161 = arith.mulf %160, %143 : vector<16x128xf32>
    %162 = arith.addf %156, %161 : vector<16x128xf32>
    %c3_i32_39 = arith.constant 3 : i32
    %163 = arith.addi %145, %c3_i32_39 : i32
    %164 = arith.index_cast %163 : i32 to index
    %165 = memref.load %arg1[%164] : memref<112xf32, #tpu.memory_space<smem>>
    %166 = vector.broadcast %165 : f32 to vector<16x128xf32>
    %167 = arith.addf %162, %166 : vector<16x128xf32>
    %c4_i32_40 = arith.constant 4 : i32
    %168 = arith.addi %145, %c4_i32_40 : i32
    %169 = arith.index_cast %168 : i32 to index
    %170 = memref.load %arg1[%169] : memref<112xf32, #tpu.memory_space<smem>>
    %171 = vector.broadcast %170 : f32 to vector<16x128xf32>
    %172 = arith.mulf %171, %140 : vector<16x128xf32>
    %c5_i32_41 = arith.constant 5 : i32
    %173 = arith.addi %145, %c5_i32_41 : i32
    %174 = arith.index_cast %173 : i32 to index
    %175 = memref.load %arg1[%174] : memref<112xf32, #tpu.memory_space<smem>>
    %176 = vector.broadcast %175 : f32 to vector<16x128xf32>
    %177 = arith.mulf %176, %137 : vector<16x128xf32>
    %178 = arith.addf %172, %177 : vector<16x128xf32>
    %c6_i32_42 = arith.constant 6 : i32
    %179 = arith.addi %145, %c6_i32_42 : i32
    %180 = arith.index_cast %179 : i32 to index
    %181 = memref.load %arg1[%180] : memref<112xf32, #tpu.memory_space<smem>>
    %182 = vector.broadcast %181 : f32 to vector<16x128xf32>
    %183 = arith.mulf %182, %143 : vector<16x128xf32>
    %184 = arith.addf %178, %183 : vector<16x128xf32>
    %c7_i32_43 = arith.constant 7 : i32
    %185 = arith.addi %145, %c7_i32_43 : i32
    %186 = arith.index_cast %185 : i32 to index
    %187 = memref.load %arg1[%186] : memref<112xf32, #tpu.memory_space<smem>>
    %188 = vector.broadcast %187 : f32 to vector<16x128xf32>
    %189 = arith.addf %184, %188 : vector<16x128xf32>
    %190 = math.tanh %167 : vector<16x128xf32>
    %191 = arith.negf %189 : vector<16x128xf32>
    %192 = math.exp %191 : vector<16x128xf32>
    %cst_44 = arith.constant 1.000000e+00 : f32
    %193 = vector.broadcast %cst_44 : f32 to vector<16x128xf32>
    %194 = arith.addf %193, %192 : vector<16x128xf32>
    %195 = arith.divf %193, %194 : vector<16x128xf32>
    %196 = arith.mulf %190, %195 : vector<16x128xf32>
    %c18_i32_45 = arith.constant 18 : i32
    %197 = arith.addi %1, %c18_i32_45 : i32
    %c3_i32_46 = arith.constant 3 : i32
    %198 = arith.addi %197, %c3_i32_46 : i32
    %c0_i32_47 = arith.constant 0 : i32
    %199 = arith.addi %198, %c0_i32_47 : i32
    %200 = arith.index_cast %199 : i32 to index
    %201 = memref.load %arg1[%200] : memref<112xf32, #tpu.memory_space<smem>>
    %202 = vector.broadcast %201 : f32 to vector<16x128xf32>
    %203 = arith.mulf %202, %196 : vector<16x128xf32>
    %204 = vector.broadcast %2 : f32 to vector<16x128xf32>
    %205 = arith.mulf %204, %196 : vector<16x128xf32>
    %cst_48 = arith.constant 1.000000e+00 : f32
    %206 = arith.subf %cst_48, %2 : f32
    %207 = arith.truncf %196 : vector<16x128xf32> to vector<16x128xbf16>
    %cst_49 = arith.constant dense<0.000000e+00> : vector<16x128xf32>
    %208 = tpu.matmul %207, %42, %cst_49 {dimension_numbers = #tpu.dot_dimension_numbers<[1], [0], [0], [1], [0, 0, 1, 1], [], []>} : vector<16x128xbf16>, vector<128x128xbf16>, vector<16x128xf32> -> vector<16x128xf32>
    %209 = vector.broadcast %206 : f32 to vector<16x128xf32>
    %210 = arith.mulf %209, %208 : vector<16x128xf32>
    %211 = arith.addf %205, %210 : vector<16x128xf32>
    %c1_i32_50 = arith.constant 1 : i32
    %212 = arith.addi %198, %c1_i32_50 : i32
    %213 = arith.index_cast %212 : i32 to index
    %214 = memref.load %arg1[%213] : memref<112xf32, #tpu.memory_space<smem>>
    %215 = vector.broadcast %214 : f32 to vector<16x128xf32>
    %216 = arith.mulf %215, %211 : vector<16x128xf32>
    %217 = arith.addf %203, %216 : vector<16x128xf32>
    %218 = vector.broadcast %2 : f32 to vector<16x128xf32>
    %219 = arith.mulf %218, %196 : vector<16x128xf32>
    %cst_51 = arith.constant 1.000000e+00 : f32
    %220 = arith.subf %cst_51, %2 : f32
    %221 = arith.truncf %211 : vector<16x128xf32> to vector<16x128xbf16>
    %cst_52 = arith.constant dense<0.000000e+00> : vector<16x128xf32>
    %222 = tpu.matmul %221, %42, %cst_52 {dimension_numbers = #tpu.dot_dimension_numbers<[1], [0], [0], [1], [0, 0, 1, 1], [], []>} : vector<16x128xbf16>, vector<128x128xbf16>, vector<16x128xf32> -> vector<16x128xf32>
    %223 = vector.broadcast %220 : f32 to vector<16x128xf32>
    %224 = arith.mulf %223, %222 : vector<16x128xf32>
    %225 = arith.addf %219, %224 : vector<16x128xf32>
    %c2_i32_53 = arith.constant 2 : i32
    %226 = arith.addi %198, %c2_i32_53 : i32
    %227 = arith.index_cast %226 : i32 to index
    %228 = memref.load %arg1[%227] : memref<112xf32, #tpu.memory_space<smem>>
    %229 = vector.broadcast %228 : f32 to vector<16x128xf32>
    %230 = arith.mulf %229, %225 : vector<16x128xf32>
    %231 = arith.addf %217, %230 : vector<16x128xf32>
    %232 = arith.addf %231, %137 : vector<16x128xf32>
    %c24_i32 = arith.constant 24 : i32
    %233 = arith.addi %1, %c24_i32 : i32
    %c0_i32_54 = arith.constant 0 : i32
    %234 = arith.addi %233, %c0_i32_54 : i32
    %235 = arith.index_cast %234 : i32 to index
    %236 = memref.load %arg1[%235] : memref<112xf32, #tpu.memory_space<smem>>
    %237 = vector.broadcast %236 : f32 to vector<16x128xf32>
    %238 = arith.mulf %237, %40 : vector<16x128xf32>
    %c1_i32_55 = arith.constant 1 : i32
    %239 = arith.addi %233, %c1_i32_55 : i32
    %240 = arith.index_cast %239 : i32 to index
    %241 = memref.load %arg1[%240] : memref<112xf32, #tpu.memory_space<smem>>
    %242 = vector.broadcast %241 : f32 to vector<16x128xf32>
    %243 = arith.mulf %242, %101 : vector<16x128xf32>
    %244 = arith.addf %238, %243 : vector<16x128xf32>
    %c2_i32_56 = arith.constant 2 : i32
    %245 = arith.addi %233, %c2_i32_56 : i32
    %246 = arith.index_cast %245 : i32 to index
    %247 = memref.load %arg1[%246] : memref<112xf32, #tpu.memory_space<smem>>
    %248 = vector.broadcast %247 : f32 to vector<16x128xf32>
    %249 = arith.mulf %248, %196 : vector<16x128xf32>
    %250 = arith.addf %244, %249 : vector<16x128xf32>
    %c3_i32_57 = arith.constant 3 : i32
    %251 = arith.addi %233, %c3_i32_57 : i32
    %252 = arith.index_cast %251 : i32 to index
    %253 = memref.load %arg1[%252] : memref<112xf32, #tpu.memory_space<smem>>
    %254 = vector.broadcast %253 : f32 to vector<16x128xf32>
    %255 = arith.mulf %254, %232 : vector<16x128xf32>
    %256 = arith.addf %250, %255 : vector<16x128xf32>
    %c4_i32_58 = arith.constant 4 : i32
    %257 = arith.addi %233, %c4_i32_58 : i32
    %258 = arith.index_cast %257 : i32 to index
    %259 = memref.load %arg1[%258] : memref<112xf32, #tpu.memory_space<smem>>
    %260 = vector.broadcast %259 : f32 to vector<16x128xf32>
    %261 = arith.addf %256, %260 : vector<16x128xf32>
    %c4_i32_59 = arith.constant 4 : i32
    %262 = arith.addi %233, %c4_i32_59 : i32
    %c1_i32_60 = arith.constant 1 : i32
    %263 = arith.addi %262, %c1_i32_60 : i32
    %264 = arith.index_cast %263 : i32 to index
    %265 = memref.load %arg1[%264] : memref<112xf32, #tpu.memory_space<smem>>
    %266 = vector.broadcast %265 : f32 to vector<16x128xf32>
    %267 = arith.mulf %261, %266 : vector<16x128xf32>
    %c4_i32_61 = arith.constant 4 : i32
    %268 = arith.addi %233, %c4_i32_61 : i32
    %c2_i32_62 = arith.constant 2 : i32
    %269 = arith.addi %268, %c2_i32_62 : i32
    %270 = arith.index_cast %269 : i32 to index
    %271 = memref.load %arg1[%270] : memref<112xf32, #tpu.memory_space<smem>>
    %272 = vector.broadcast %271 : f32 to vector<16x128xf32>
    %273 = arith.addf %267, %272 : vector<16x128xf32>
    %cst_63 = arith.constant 0.000000e+00 : f32
    %274 = vector.broadcast %cst_63 : f32 to vector<16x128xf32>
    %275 = arith.cmpf oge, %273, %274 : vector<16x128xf32>
    %cst_64 = arith.constant 5.000000e-01 : f32
    %276 = vector.broadcast %cst_64 : f32 to vector<16x128xf32>
    %277 = arith.mulf %276, %273 : vector<16x128xf32>
    %278 = arith.select %275, %273, %277 : vector<16x128xi1>, vector<16x128xf32>
    %c4_i32_65 = arith.constant 4 : i32
    %279 = arith.addi %233, %c4_i32_65 : i32
    %c3_i32_66 = arith.constant 3 : i32
    %280 = arith.addi %279, %c3_i32_66 : i32
    %281 = arith.index_cast %280 : i32 to index
    %282 = memref.load %arg1[%281] : memref<112xf32, #tpu.memory_space<smem>>
    %283 = vector.broadcast %282 : f32 to vector<16x128xf32>
    %284 = arith.mulf %283, %278 : vector<16x128xf32>
    %c4_i32_67 = arith.constant 4 : i32
    %285 = arith.addi %233, %c4_i32_67 : i32
    %c4_i32_68 = arith.constant 4 : i32
    %286 = arith.addi %285, %c4_i32_68 : i32
    %287 = arith.index_cast %286 : i32 to index
    %288 = memref.load %arg1[%287] : memref<112xf32, #tpu.memory_space<smem>>
    %289 = vector.broadcast %288 : f32 to vector<16x128xf32>
    %290 = arith.addf %284, %289 : vector<16x128xf32>
    %c4_i32_69 = arith.constant 4 : i32
    %291 = arith.addi %233, %c4_i32_69 : i32
    %c5_i32_70 = arith.constant 5 : i32
    %292 = arith.addi %291, %c5_i32_70 : i32
    %293 = arith.index_cast %292 : i32 to index
    %294 = memref.load %arg1[%293] : memref<112xf32, #tpu.memory_space<smem>>
    %295 = vector.broadcast %294 : f32 to vector<16x128xf32>
    %296 = arith.mulf %290, %295 : vector<16x128xf32>
    %c4_i32_71 = arith.constant 4 : i32
    %297 = arith.addi %233, %c4_i32_71 : i32
    %c6_i32_72 = arith.constant 6 : i32
    %298 = arith.addi %297, %c6_i32_72 : i32
    %299 = arith.index_cast %298 : i32 to index
    %300 = memref.load %arg1[%299] : memref<112xf32, #tpu.memory_space<smem>>
    %301 = vector.broadcast %300 : f32 to vector<16x128xf32>
    %302 = arith.addf %296, %301 : vector<16x128xf32>
    %cst_73 = arith.constant 0.000000e+00 : f32
    %303 = vector.broadcast %cst_73 : f32 to vector<16x128xf32>
    %304 = arith.cmpf oge, %302, %303 : vector<16x128xf32>
    %cst_74 = arith.constant 5.000000e-01 : f32
    %305 = vector.broadcast %cst_74 : f32 to vector<16x128xf32>
    %306 = arith.mulf %305, %302 : vector<16x128xf32>
    %307 = arith.select %304, %302, %306 : vector<16x128xi1>, vector<16x128xf32>
    %c4_i32_75 = arith.constant 4 : i32
    %308 = arith.addi %233, %c4_i32_75 : i32
    %c7_i32_76 = arith.constant 7 : i32
    %309 = arith.addi %308, %c7_i32_76 : i32
    %310 = arith.index_cast %309 : i32 to index
    %311 = memref.load %arg1[%310] : memref<112xf32, #tpu.memory_space<smem>>
    %312 = vector.broadcast %311 : f32 to vector<16x128xf32>
    %313 = arith.mulf %312, %307 : vector<16x128xf32>
    %c4_i32_77 = arith.constant 4 : i32
    %314 = arith.addi %233, %c4_i32_77 : i32
    %c8_i32_78 = arith.constant 8 : i32
    %315 = arith.addi %314, %c8_i32_78 : i32
    %316 = arith.index_cast %315 : i32 to index
    %317 = memref.load %arg1[%316] : memref<112xf32, #tpu.memory_space<smem>>
    %318 = vector.broadcast %317 : f32 to vector<16x128xf32>
    %319 = arith.addf %313, %318 : vector<16x128xf32>
    %320 = arith.addf %278, %319 : vector<16x128xf32>
    %cst_79 = arith.constant 0.000000e+00 : f32
    %321 = vector.broadcast %cst_79 : f32 to vector<16x128xf32>
    %322 = arith.cmpf oge, %320, %321 : vector<16x128xf32>
    %cst_80 = arith.constant 5.000000e-01 : f32
    %323 = vector.broadcast %cst_80 : f32 to vector<16x128xf32>
    %324 = arith.mulf %323, %320 : vector<16x128xf32>
    %325 = arith.select %322, %320, %324 : vector<16x128xi1>, vector<16x128xf32>
    %c0_81 = arith.constant 0 : index
    %c0_82 = arith.constant 0 : index
    %c0_83 = arith.constant 0 : index
    %326 = vector.load %arg4[%c0_81, %c0_82, %c0_83] : memref<1x16x16xf32, #tpu.memory_space<vmem>>, vector<1x16x16xf32>
    %327 = vector.shape_cast %326 : vector<1x16x16xf32> to vector<16x16xf32>
    %cst_84 = arith.constant dense<0.000000e+00> : vector<16x128xf32>
    %328 = tpu.matmul %327, %325, %cst_84 {dimension_numbers = #tpu.dot_dimension_numbers<[1], [0], [0], [1], [0, 0, 1, 1], [], []>} : vector<16x16xf32>, vector<16x128xf32>, vector<16x128xf32> -> vector<16x128xf32>
    %c0_85 = arith.constant 0 : index
    %c0_86 = arith.constant 0 : index
    %c0_87 = arith.constant 0 : index
    %329 = vector.load %arg5[%c0_85, %c0_86, %c0_87] : memref<1x16x128xf32, #tpu.memory_space<vmem>>, vector<1x16x128xf32>
    %330 = vector.shape_cast %329 : vector<1x16x128xf32> to vector<16x128xf32>
    %331 = vector.shape_cast %328 : vector<16x128xf32> to vector<1x16x128xf32>
    tpu.vector_store %arg5[%c0_85, %c0_86, %c0_87], %331 {strides = array<i32>} : memref<1x16x128xf32, #tpu.memory_space<vmem>>, vector<1x16x128xf32>,
    return
  }
  func.func @transform_0(%arg0: i32) -> i32 {
    %c0_i32 = arith.constant 0 : i32
    %c0_i32_0 = arith.constant 0 : i32
    return %c0_i32 : i32
  }
  func.func @transform_1(%arg0: i32) -> (i32, i32, i32) {
    %c0_i32 = arith.constant 0 : i32
    %c0_i32_0 = arith.constant 0 : i32
    %c0_i32_1 = arith.constant 0 : i32
    return %arg0, %c0_i32, %c0_i32_0 : i32, i32, i32
  }
  func.func @transform_2(%arg0: i32) -> (i32, i32, i32) {
    %c0_i32 = arith.constant 0 : i32
    %c0_i32_0 = arith.constant 0 : i32
    %c0_i32_1 = arith.constant 0 : i32
    return %arg0, %c0_i32, %c0_i32_0 : i32, i32, i32
  }
  func.func @transform_3(%arg0: i32) -> (i32, i32, i32) {
    %c0_i32 = arith.constant 0 : i32
    %c0_i32_0 = arith.constant 0 : i32
    %c0_i32_1 = arith.constant 0 : i32
    return %arg0, %c0_i32, %c0_i32_0 : i32, i32, i32
  }
  func.func @transform_4(%arg0: i32) -> (i32, i32, i32) {
    %c0_i32 = arith.constant 0 : i32
    %c0_i32_0 = arith.constant 0 : i32
    %c0_i32_1 = arith.constant 0 : i32
    return %arg0, %c0_i32, %c0_i32_0 : i32, i32, i32
  }
}

</mosaic_0001>

<bundles_post_ra>
// kernel: mtgnn_forward.1
= control target key start
LH: loop header
LB: loop body
LE: loop exit
PB: predicated region body
PF: predicated region fallthrough
CT: control target
= control target key end

     0   :  { %9 = vsyncpa [#allocation3], 0  ;;  %s1078_s15 = smov 0   ;;  %s1354_s0 = inlined_call_operand.vmem [shape: f32[112], index: 0, kind: input, shape index: {}]   ;;  %s1355_s1 = inlined_call_operand.vmem [shape: f32[3,16,128], index: 1, kind: input, shape index: {}]   ;;  %s1356_s2 = inlined_call_operand.vmem [shape: bf16[3,128,128], index: 2, kind: input, shape index: {}]   ;;  %s1357_s3 = inlined_call_operand.vmem [shape: f32[3,16,16], index: 3, kind: input, shape index: {}]   ;;  %s1358_s4 = inlined_call_operand.vmem [shape: f32[3,16,128], index: 4, kind: output, shape index: {}]  }
   0x1 LB: > { %s913_s16 = sadd.s32 4294967295, %s1050_s15   ;;  %p915_p0 = scmp.ge.s32.totalorder %s1050_s15, 1  ;;  %s1050_s15 = sphi %s1078_s15, %s15_s15  }
   0x2   : > { %p145_p1 = scmp.lt.s32.totalorder %s1050_s15, 4  ;;  %s157_s19 = sshll.u32 %s1354_s0, 4  ;;  %s158_s19 = int_to_ptr.vmem [resolvable:$true] %s157_s19 }
   0x3   : > { %p990_p3 = scmp.eq.s32.totalorder %s913_s16, 0  ;;  %s1052_s20 = smov [#allocation2]  }
   0x4   : > { %p146_p2 = pnand %p915_p0, %p145_p1 }
   0x6   : > { %p986_p4 = pneg %p146_p2  ;;  %194 = sbr.rel (%p146_p2) target bundleno = 865 (0x361), region = 36 }
   0x8   : > { %p987_p5 = pnand %p990_p3, %p986_p4 }
   0xa   : > { %989 = dma.vmem_to_smem (!%p987_p5), %s158_s19, 16, %s1052_s20, [#allocation3]  }
   0xb   : > { %1045 = dma.done.wait (%p990_p3), [#allocation3], 16  }
   0xc   : > { %1047 = vsyncadd (%p990_p3), [#allocation3], 4294967280 }
   0xd   : > { %201 = sfence }
   0xe   : > { %p232_p6 = scmp.lt.s32.totalorder %s913_s16, 2  ;;  %s1089_s21 = smul.u32 37, %s913_s16  ;;  %v255_v0 = vlaneseq }
   0xf   : > { %s254_s26 = sld [smem:[#allocation2]] }
  0x10   : > { %s1368_s16 = smov (!%p232_p6, %s913_s16), 2  ;;  %s253_s22 = sadd.s32 1, %s1089_s21  ;;  %v1101_v2 = vshrl.u32 %v255_v0, 7  ;;  %v283_v5 = vand.u32 127, %v255_v0 }
  0x11   : > { %s969_s23 = sshll.u32 %s1368_s16, 6  ;;  %s294_s24 = sadd.s32 2, %s1089_s21 }
  0x12   : > { %s1096_s27 = scalar_lea.vmem %s1356_s2, %s969_s23  ;;  %s1098_s28 = sshll.u32 %s1368_s16, 4  ;;  %v257_v4 = vadd.s32 8, %v1101_v2  ;;  %v262_v9 = vand.u32 7, %v1101_v2  ;;  %vm299_vm0 = vcmp.lt.s32.totalorder %v283_v5, 10  ;;  %vm320_vm1 = vcmp.lt.s32.totalorder %v1101_v2, 1 }
  0x13   : > { %v979_v1 = vld [vmem:[%s1096_s27 + $0x38] sm:$0xff]  ;;  %s290_s29 = sld [smem:[#allocation2 + %s253_s22]]  ;;  %v978_v3 = vld [vmem:[%s1096_s27 + $0x30] sm:$0xff]  ;;  %s236_s6 = scalar_lea.vmem %s1355_s1, %s1098_s28  ;;  %v977_v8 = vld [vmem:[%s1096_s27 + $0x28] sm:$0xff]  ;;  %vm327_vm2 = vcmp.lt.s32.totalorder %v1101_v2, 7 }
  0x14   : > { %480 = vmatpush.bf16.msra.mxu0 %v979_v1  ;;  %s295_s7 = sld [smem:[#allocation2 + %s294_s24]]  ;;  %507 = vmatpush.bf16.msra.mxu1 %v979_v1  ;;  %v288_v6 = vld [vmem:[%s236_s6] sm:$0xff]  ;;  %v289_v7 = vld [vmem:[%s236_s6 + $0x8] sm:$0xff]  ;;  %s356_s8 = sadd.s32 7, %s1089_s21  ;;  %v269_v11 = vand.u32 7, %v257_v4  ;;  %vm1124_vm3 = vcmp.ne.s32.totalorder %v262_v9, 0 }
  0x15   : > { %644 = vmatpush.bf16.msra.mxu2 %v979_v1  ;;  %670 = vmatpush.bf16.msra.mxu3 %v979_v1  ;;  %s1112_s9 = sld [smem:[#allocation2 + %s356_s8]]  ;;  %s361_s10 = sadd.s32 8, %s1089_s21  ;;  %v976_v15 = vld [vmem:[%s1096_s27 + $0x20] sm:$0xff]  ;;  %v975_v26 = vld [vmem:[%s1096_s27 + $0x18] sm:$0xff]  ;;  %vm1144_vm5 = vcmp.ne.s32.totalorder %v262_v9, 7  ;;  %v974_v39 = vld [vmem:[%s1096_s27 + $0x10] sm:$0xff] }
  0x16   : > { %s1115_s11 = sld [smem:[#allocation2 + %s361_s10]]  ;;  %s368_s12 = sadd.s32 9, %s1089_s21  ;;  %vm1128_vm4 = vcmp.ne.s32.totalorder %v269_v11, 0  ;;  %vm1148_vm6 = vcmp.ne.s32.totalorder %v269_v11, 7  ;;  %v973_v50 = vld [vmem:[%s1096_s27 + $0x8] sm:$0xff]  ;;  %v972_v57 = vld [vmem:[%s1096_s27] sm:$0xff] }
  0x17   : > { %s375_s13 = sadd.s32 10, %s1089_s21  ;;  %s1122_s14 = sld [smem:[#allocation2 + %s368_s12]] }
  0x18   : > { %481 = vmatpush.bf16.msra.mxu0 %v978_v3  ;;  %508 = vmatpush.bf16.msra.mxu1 %v978_v3  ;;  %s332_s16 = sadd.s32 3, %s1089_s21  ;;  %s1141_s17 = sld [smem:[#allocation2 + %s375_s13]] }
  0x19   : > { %v291_v10 = vstv %s290_s29  ;;  %645 = vmatpush.bf16.msra.mxu2 %v978_v3  ;;  %671 = vmatpush.bf16.msra.mxu3 %v978_v3  ;;  %s337_s18 = sadd.s32 4, %s1089_s21  ;;  %s1167_s19 = sld [smem:[#allocation2 + %s332_s16]] }
  0x1a   : > { %v292_v12 = vmul.f32 %v291_v10, %v288_v6  ;;  %v293_v13 = vmul.f32 %v291_v10, %v289_v7  ;;  %v296_v14 = vstv %s295_s7  ;;  %s1173_s20 = sld [smem:[#allocation2 + %s337_s18]]  ;;  %s344_s22 = sadd.s32 5, %s1089_s21 }
  0x1b   : > { %v358_v29 = vstv %s1112_s9  ;;  %s1180_s23 = sld [smem:[#allocation2 + %s344_s22]]  ;;  %s351_s24 = sadd.s32 6, %s1089_s21 }
  0x1c   : > { %482 = vmatpush.bf16.msra.mxu0 %v977_v8  ;;  %v297_v16 = vadd.f32 %v296_v14, %v292_v12  ;;  %v298_v17 = vadd.f32 %v296_v14, %v293_v13  ;;  %509 = vmatpush.bf16.msra.mxu1 %v977_v8  ;;  %v363_v30 = vstv %s1115_s11  ;;  %s352_s25 = sld [smem:[#allocation2 + %s351_s24]]  ;;  %s422_s27 = sadd.s32 19, %s1089_s21 }
  0x1d   : > { %646 = vmatpush.bf16.msra.mxu2 %v977_v8  ;;  %672 = vmatpush.bf16.msra.mxu3 %v977_v8  ;;  %v370_v44 = vstv %s1122_s14  ;;  %s499_s29 = sadd.s32 20, %s1089_s21  ;;  %s423_s30 = sld [smem:[#allocation2 + %s422_s27]] }
  0x1e   : > { %v1132_v20 = vsel %vm299_vm0, %v297_v16, 0.0  ;;  %v1134_v21 = vsel %vm299_vm0, %v298_v17, 0.0  ;;  %v377_v49 = vstv %s1141_s17  ;;  %s430_s5 = ssub.f32 1.0, %s254_s26  ;;  %s525_s7 = sadd.s32 21, %s1089_s21 }
  0x1f   : > { %v318_v22 = vrot.slane %v1132_v20, 7  ;;  %v319_v23 = vrot.slane %v1134_v21, 7  ;;  %v325_v24 = vrot.slane %v1132_v20, 1  ;;  %v326_v25 = vrot.slane %v1134_v21, 1  ;;  %s500_s6 = sld [smem:[#allocation2 + %s499_s29]]  ;;  %s575_s9 = sadd.s32 16, %s1089_s21 }
  0x20   : > { %483 = vmatpush.bf16.msra.mxu0 %v976_v15  ;;  %510 = vmatpush.bf16.msra.mxu1 %v976_v15  ;;  %v364_v42 = vmul.f32 %v363_v30, %v1132_v20  ;;  %v365_v43 = vmul.f32 %v363_v30, %v1134_v21  ;;  %v334_v55 = vstv %s1167_s19  ;;  %v339_v56 = vstv %s1173_s20  ;;  %s526_s8 = sld [smem:[#allocation2 + %s525_s7]]  ;;  %s570_s10 = sadd.s32 15, %s1089_s21 }
  0x21   : > { %v321_v31 = vsel %vm320_vm1, %v318_v22, %v319_v23  ;;  %v322_v32 = vsel %vm320_vm1, %v319_v23, %v318_v22  ;;  %v328_v33 = vsel %vm327_vm2, %v325_v24, %v326_v25  ;;  %v329_v34 = vsel %vm327_vm2, %v326_v25, %v325_v24  ;;  %647 = vmatpush.bf16.msra.mxu2 %v976_v15  ;;  %s1216_s11 = sld [smem:[#allocation2 + %s575_s9]]  ;;  %s582_s12 = sadd.s32 17, %s1089_s21 }
  0x22   : > { %v323_v35 = vsel %vm1124_vm3, %v322_v32, 0.0  ;;  %v324_v36 = vsel %vm1128_vm4, %v321_v31, 0.0  ;;  %673 = vmatpush.bf16.msra.mxu3 %v976_v15  ;;  %v330_v37 = vsel %vm1144_vm5, %v328_v33, 0.0  ;;  %v331_v38 = vsel %vm1148_vm6, %v329_v34, 0.0  ;;  %s1219_s13 = sld [smem:[#allocation2 + %s570_s10]]  ;;  %s589_s16 = sadd.s32 18, %s1089_s21 }
  0x23   : > { %v359_v40 = vmul.f32 %v358_v29, %v323_v35  ;;  %v360_v41 = vmul.f32 %v358_v29, %v324_v36  ;;  %v371_v47 = vmul.f32 %v370_v44, %v330_v37  ;;  %v372_v48 = vmul.f32 %v370_v44, %v331_v38  ;;  %s1221_s14 = sld [smem:[#allocation2 + %s582_s12]]  ;;  %s546_s18 = sadd.s32 11, %s1089_s21 }
  0x24   : > { %484 = vmatpush.bf16.msra.mxu0 %v975_v26  ;;  %511 = vmatpush.bf16.msra.mxu1 %v975_v26  ;;  %v335_v60 = vmul.f32 %v334_v55, %v323_v35  ;;  %v340_v61 = vmul.f32 %v339_v56, %v1132_v20  ;;  %v336_v62 = vmul.f32 %v334_v55, %v324_v36  ;;  %v346_v0 = vstv %s1180_s23  ;;  %s1230_s17 = sld [smem:[#allocation2 + %s589_s16]]  ;;  %s551_s19 = sadd.s32 12, %s1089_s21 }
  0x25   : > { %648 = vmatpush.bf16.msra.mxu2 %v975_v26  ;;  %v366_v45 = vadd.f32 %v364_v42, %v359_v40  ;;  %v367_v46 = vadd.f32 %v365_v43, %v360_v41  ;;  %v341_v63 = vmul.f32 %v339_v56, %v1134_v21  ;;  %v347_v3 = vmul.f32 %v346_v0, %v330_v37  ;;  %s547_s20 = sld [smem:[#allocation2 + %s546_s18]]  ;;  %s558_s23 = sadd.s32 13, %s1089_s21 }
  0x26   : > { %674 = vmatpush.bf16.msra.mxu3 %v975_v26  ;;  %v342_v1 = vadd.f32 %v340_v61, %v335_v60  ;;  %v348_v5 = vmul.f32 %v346_v0, %v331_v38  ;;  %v353_v12 = vstv %s352_s25  ;;  %s552_s22 = sld [smem:[#allocation2 + %s551_s19]]  ;;  %s565_s25 = sadd.s32 14, %s1089_s21 }
  0x27   : > { %v373_v51 = vadd.f32 %v371_v47, %v366_v45  ;;  %v374_v52 = vadd.f32 %v372_v48, %v367_v46  ;;  %v343_v4 = vadd.f32 %v341_v63, %v336_v62  ;;  %v1199_v46 = vstv %s254_s26  ;;  %s559_s24 = sld [smem:[#allocation2 + %s558_s23]]  ;;  %s702_s27 = sadd.s32 26, %s1089_s21 }
  0x28   : > { %485 = vmatpush.bf16.msra.mxu0 %v974_v39  ;;  %512 = vmatpush.bf16.msra.mxu1 %v974_v39  ;;  %v349_v9 = vadd.f32 %v347_v3, %v342_v1  ;;  %v1201_v47 = vstv %s430_s5  ;;  %v527_v1 = vstv %s526_s8  ;;  %s566_s26 = sld [smem:[#allocation2 + %s565_s25]]  ;;  %s697_s29 = sadd.s32 25, %s1089_s21 }
  0x29   : > { %649 = vmatpush.bf16.msra.mxu2 %v974_v39  ;;  %v378_v53 = vadd.f32 %v377_v49, %v373_v51  ;;  %v379_v54 = vadd.f32 %v377_v49, %v374_v52  ;;  %v350_v11 = vadd.f32 %v348_v5, %v343_v4  ;;  %v424_v49 = vstv %s423_s30  ;;  %s1266_s30 = sld [smem:[#allocation2 + %s702_s27]]  ;;  %s636_s8 = sadd.s32 22, %s1089_s21 }
  0x2a   : > { %675 = vmatpush.bf16.msra.mxu3 %v974_v39  ;;  %v354_v13 = vadd.f32 %v353_v12, %v349_v9  ;;  %v501_v52 = vstv %s500_s6  ;;  %s1268_s5 = sld [smem:[#allocation2 + %s697_s29]]  ;;  %s709_s6 = sadd.s32 27, %s1089_s21 }
  0x2b   : > { %v928_v58 = vmul.f32 -1.442695, %v378_v53  ;;  %v929_v59 = vmul.f32 -1.442695, %v379_v54  ;;  %v355_v14 = vadd.f32 %v353_v12, %v350_v11  ;;  %v548_v27 = vstv %s547_s20  ;;  %s1272_s7 = sld [smem:[#allocation2 + %s709_s6]]  ;;  %s662_s9 = sadd.s32 23, %s1089_s21 }
  0x2c   : > { %486 = vmatpush.bf16.msra.mxu0 %v973_v50  ;;  %513 = vmatpush.bf16.msra.mxu1 %v973_v50  ;;  %s637_s10 = sld [smem:[#allocation2 + %s636_s8]]  ;;  %s688_s12 = sadd.s32 24, %s1089_s21 }
  0x2d   : > { %650 = vmatpush.bf16.msra.mxu2 %v973_v50  ;;  %1001 = vpow2.f32 %v928_v58  ;;  %s728_s18 = sadd.s32 30, %s1089_s21  ;;  %s733_s20 = sadd.s32 31, %s1089_s21 }
  0x2e   : > { %676 = vmatpush.bf16.msra.mxu3 %v973_v50  ;;  %1003 = vpow2.f32 %v929_v59  ;;  %s1308_s23 = sld [smem:[#allocation2 + %s733_s20]]  ;;  %s749_s25 = sadd.s32 33, %s1089_s21 }
  0x2f   : > { %s754_s27 = sadd.s32 34, %s1089_s21  ;;  %s1328_s29 = sld [smem:[#allocation2 + %s749_s25]] }
  0x30   : > { %487 = vmatpush.bf16.msra.mxu0 %v972_v57  ;;  %514 = vmatpush.bf16.msra.mxu1 %v972_v57 }
  0x31   : > { %651 = vmatpush.bf16.msra.mxu2 %v972_v57 }
  0x32   : > { %677 = vmatpush.bf16.msra.mxu3 %v972_v57 }
  0x33   : > { %v1002_v6 = vpop.eup %1001 }
  0x34   : > { %v1004_v7 = vpop.eup %1003  ;;  %v388_v8 = vadd.f32 1.0, %v1002_v6 }
  0x35   : > { %v389_v10 = vadd.f32 1.0, %v1004_v7 }
  0x36   : > { %1005 = vrcp.f32 %v388_v8  ;;  %vm395_vm7 = vweird.f32 %v388_v8  ;;  %v401_v22 = vand.u32 2147483648, %v388_v8  ;;  %v399_v25 = vand.u32 2147483647, %v388_v8 }
  0x37   : > { %1007 = vrcp.f32 %v389_v10  ;;  %v416_v26 = vand.u32 2147483648, %v389_v10  ;;  %vm410_vm9 = vweird.f32 %v389_v10  ;;  %v414_v30 = vand.u32 2147483647, %v389_v10 }
  0x38   : > { %1009 = vtanh.f32 %v354_v13  ;;  %v402_v32 = vor.u32 1.1754944e-38, %v401_v22  ;;  %vm400_vm12 = vcmp.eq.f32.partialorder %v399_v25, 8.507059e+37 }
  0x39   : > { %1011 = vtanh.f32 %v355_v14  ;;  %v417_v36 = vor.u32 1.1754944e-38, %v416_v26  ;;  %vm415_vm14 = vcmp.eq.f32.partialorder %v414_v30, 8.507059e+37 }
  0x3c   : > { %v1006_v15 = vpop.eup %1005 }
  0x3d   : > { %v1008_v16 = vpop.eup %1007  ;;  %v391_v17 = vmul.f32 %v1006_v15, %v388_v8  ;;  %vm396_vm8 = vweird.f32 %v1006_v15 }
  0x3e   : > { %v406_v23 = vmul.f32 %v1008_v16, %v389_v10  ;;  %vm411_vm10 = vweird.f32 %v1008_v16  ;;  %vm397_vm11 = vmor %vm395_vm7, %vm396_vm8  ;;  %v1010_v34 = vpop.eup %1009 }
  0x3f   : > { %v392_v24 = vsub.f32 1.0, %v391_v17  ;;  %vm412_vm13 = vmor %vm410_vm9, %vm411_vm10  ;;  %v1012_v37 = vpop.eup %1011 }
  0x40   : > { %v407_v29 = vsub.f32 1.0, %v406_v23  ;;  %v577_v23 = vstv %s1216_s11  ;;  %s663_s11 = sld [smem:[#allocation2 + %s662_s9]]  ;;  %s775_s9 = sadd.s32 37, %s1089_s21 }
  0x41   : > { %v393_v31 = vmul.f32 %v1006_v15, %v392_v24  ;;  %v572_v24 = vstv %s1219_s13  ;;  %s689_s13 = sld [smem:[#allocation2 + %s688_s12]]  ;;  %s246_s12 = scalar_lea.vmem %s1357_s3, %s1098_s28 }
  0x42   : > { %v408_v33 = vmul.f32 %v1008_v16, %v407_v29 }
  0x43   : > { %v394_v35 = vadd.f32 %v1006_v15, %v393_v31 }
  0x44   : > { %v409_v38 = vadd.f32 %v1008_v16, %v408_v33 }
  0x45   : > { %v398_v39 = vsel %vm397_vm11, %v1006_v15, %v394_v35 }
  0x46   : > { %v403_v40 = vsel %vm400_vm12, %v402_v32, %v398_v39  ;;  %v413_v41 = vsel %vm412_vm13, %v1008_v16, %v409_v38  ;;  %vm790_vm13 = vcmask 130048  }
  0x47   : > { %v418_v42 = vsel %vm415_vm14, %v417_v36, %v413_v41  ;;  %v1191_v43 = vmul.f32 %v1010_v34, %v403_v40  ;;  %v584_v34 = vstv %s1221_s14  ;;  %v591_v40 = vstv %s1230_s17  ;;  %s716_s14 = sadd.s32 28, %s1089_s21  ;;  %s723_s17 = sadd.s32 29, %s1089_s21 }
  0x48   : > { %v1193_v44 = vmul.f32 %v1012_v37, %v418_v42  ;;  %s1297_s16 = sld [smem:[#allocation2 + %s716_s14]] }
  0x49   : > { %v428_v48 = vmul.f32 %v1199_v46, %v1191_v43  ;;  %v425_v53 = vmul.f32 %v424_v49, %v1191_v43  ;;  %s1302_s19 = sld [smem:[#allocation2 + %s723_s17]] }
  0x4a   : > { %v431_v45 = vpack.c.bf16 %v1193_v44, %v1191_v43  ;;  %v429_v57 = vmul.f32 %v1199_v46, %v1193_v44  ;;  %v426_v6 = vmul.f32 %v424_v49, %v1193_v44 }
  0x4c   : > { %488 = vmatmul.bf16.vlgmr.msra.gmra.mxu0 %v431_v45 }
  0xc9   : > { %v489_v50 = vpop.f32.mrf.mxu0 }
  0xca   : > { %v495_v51 = vmul.f32 %v1201_v47, %v489_v50 }
  0xcc   : > { %v497_v54 = vadd.f32 %v495_v51, %v428_v48  ;;  %v553_v51 = vstv %s552_s22  ;;  %s1305_s22 = sld [smem:[#allocation2 + %s728_s18]] }
  0xce   : > { %v502_v55 = vmul.f32 %v501_v52, %v497_v54 }
  0xd0   : > { %v504_v56 = vadd.f32 %v502_v55, %v425_v53 }
  0xd1   : > { %v491_v58 = vpop.f32.mrf.mxu0 }
  0xd2   : > { %v496_v59 = vmul.f32 %v1201_v47, %v491_v58 }
  0xd4   : > { %v498_v60 = vadd.f32 %v496_v59, %v429_v57 }
  0xd6   : > { %v506_v61 = vpack.c.bf16 %v498_v60, %v497_v54  ;;  %v503_v7 = vmul.f32 %v501_v52, %v498_v60 }
  0xd8   : > { %515 = vmatmul.bf16.vlgmr.msra.gmra.mxu1 %v506_v61  ;;  %v505_v10 = vadd.f32 %v503_v7, %v426_v6 }
 0x155   : > { %v516_v62 = vpop.f32.mrf.mxu1 }
 0x156   : > { %v521_v63 = vmul.f32 %v516_v62, %v1201_v47 }
 0x158   : > { %v523_v0 = vadd.f32 %v521_v63, %v428_v48 }
 0x15a   : > { %v528_v3 = vmul.f32 %v527_v1, %v523_v0 }
 0x15c   : > { %v530_v8 = vadd.f32 %v528_v3, %v504_v56  ;;  %v560_v56 = vstv %s559_s24  ;;  %s744_s24 = sadd.s32 32, %s1089_s21 }
 0x15d   : > { %v518_v4 = vpop.f32.mrf.mxu1 }
 0x15e   : > { %v522_v5 = vmul.f32 %v518_v4, %v1201_v47  ;;  %v1224_v12 = vadd.f32 %v530_v8, %v1132_v20  ;;  %v567_v4 = vstv %s566_s26  ;;  %s1321_s26 = sld [smem:[#allocation2 + %s744_s24]] }
 0x160   : > { %v524_v9 = vadd.f32 %v522_v5, %v429_v57  ;;  %v534_v15 = vrot.slane %v1224_v12, 7  ;;  %v540_v16 = vrot.slane %v1224_v12, 1  ;;  %v578_v37 = vmul.f32 %v577_v23, %v1224_v12 }
 0x161   : > { %v554_v54 = vmul.f32 %v553_v51, %v1224_v12 }
 0x162   : > { %v529_v11 = vmul.f32 %v527_v1, %v524_v9 }
 0x164   : > { %v531_v13 = vadd.f32 %v529_v11, %v505_v10  ;;  %v704_v11 = vstv %s1266_s30  ;;  %s759_s30 = sadd.s32 35, %s1089_s21 }
 0x165   : > { %s1335_s6 = sld [smem:[#allocation2 + %s759_s30]] }
 0x166   : > { %v1228_v14 = vadd.f32 %v531_v13, %v1134_v21 }
 0x168   : > { %v535_v17 = vrot.slane %v1228_v14, 7  ;;  %v541_v22 = vrot.slane %v1228_v14, 1  ;;  %v579_v36 = vmul.f32 %v577_v23, %v1228_v14  ;;  %v555_v55 = vmul.f32 %v553_v51, %v1228_v14 }
 0x16a   : > { %v536_v25 = vsel %vm320_vm1, %v534_v15, %v535_v17  ;;  %v537_v26 = vsel %vm320_vm1, %v535_v17, %v534_v15  ;;  %v542_v29 = vsel %vm327_vm2, %v540_v16, %v541_v22  ;;  %v543_v30 = vsel %vm327_vm2, %v541_v22, %v540_v16 }
 0x16b   : > { %v539_v31 = vsel %vm1128_vm4, %v536_v25, 0.0  ;;  %v538_v32 = vsel %vm1124_vm3, %v537_v26, 0.0  ;;  %v545_v33 = vsel %vm1148_vm6, %v543_v30, 0.0  ;;  %v544_v2 = vsel %vm1144_vm5, %v542_v29, 0.0 }
 0x16c   : > { %v574_v35 = vmul.f32 %v572_v24, %v539_v31  ;;  %v573_v19 = vmul.f32 %v572_v24, %v538_v32  ;;  %v586_v38 = vmul.f32 %v584_v34, %v545_v33  ;;  %v585_v28 = vmul.f32 %v584_v34, %v544_v2 }
 0x16d   : > { %v549_v52 = vmul.f32 %v548_v27, %v538_v32  ;;  %v550_v53 = vmul.f32 %v548_v27, %v539_v31  ;;  %v561_v62 = vmul.f32 %v560_v56, %v544_v2  ;;  %v562_v0 = vmul.f32 %v560_v56, %v545_v33 }
 0x16e   : > { %v581_v18 = vadd.f32 %v579_v36, %v574_v35  ;;  %v580_v39 = vadd.f32 %v578_v37, %v573_v19  ;;  %v699_v17 = vstv %s1268_s5  ;;  %v705_v29 = vmul.f32 %v704_v11, %v1191_v43  ;;  %s1333_s5 = sld [smem:[#allocation2 + %s754_s27]] }
 0x16f   : > { %v556_v58 = vadd.f32 %v554_v54, %v549_v52  ;;  %v557_v60 = vadd.f32 %v555_v55, %v550_v53  ;;  %v700_v33 = vmul.f32 %v699_v17, %v1132_v20  ;;  %v664_v27 = vstv %s663_s11 }
 0x170   : > { %v588_v41 = vadd.f32 %v586_v38, %v581_v18  ;;  %v587_v42 = vadd.f32 %v585_v28, %v580_v39  ;;  %v711_v38 = vstv %s1272_s7  ;;  %s770_s7 = sadd.s32 36, %s1089_s21 }
 0x171   : > { %v563_v1 = vadd.f32 %v561_v62, %v556_v58  ;;  %v564_v3 = vadd.f32 %v562_v0, %v557_v60  ;;  %v707_v28 = vadd.f32 %v705_v29, %v700_v33  ;;  %s771_s8 = sld [smem:[#allocation2 + %s770_s7]] }
 0x172   : > { %v593_v45 = vadd.f32 %v591_v40, %v588_v41  ;;  %v592_v48 = vadd.f32 %v591_v40, %v587_v42 }
 0x173   : > { %v568_v5 = vadd.f32 %v567_v4, %v563_v1  ;;  %v569_v7 = vadd.f32 %v567_v4, %v564_v3  ;;  %v718_v4 = vstv %s1297_s16  ;;  %s251_s16 = scalar_lea.vmem %s1358_s4, %s1098_s28 }
 0x174   : > { %v963_v49 = vmul.f32 -1.442695, %v593_v45  ;;  %v962_v50 = vmul.f32 -1.442695, %v592_v48 }
 0x176   : > { %1013 = vpow2.f32 %v963_v49  ;;  %v638_v49 = vstv %s637_s10  ;;  %s776_s10 = sld [smem:[#allocation2 + %s775_s9]] }
 0x177   : > { %1015 = vpow2.f32 %v962_v50 }
 0x17c   : > { %v1014_v57 = vpop.eup %1013 }
 0x17d   : > { %v1016_v59 = vpop.eup %1015  ;;  %v603_v61 = vadd.f32 1.0, %v1014_v57 }
 0x17e   : > { %v602_v63 = vadd.f32 1.0, %v1016_v59 }
 0x17f   : > { %1017 = vrcp.f32 %v603_v61  ;;  %v630_v16 = vand.u32 2147483648, %v603_v61  ;;  %v628_v24 = vand.u32 2147483647, %v603_v61  ;;  %vm624_vm1 = vweird.f32 %v603_v61 }
 0x180   : > { %1019 = vrcp.f32 %v602_v63  ;;  %v615_v22 = vand.u32 2147483648, %v602_v63  ;;  %v613_v26 = vand.u32 2147483647, %v602_v63  ;;  %vm609_vm2 = vweird.f32 %v602_v63 }
 0x181   : > { %1021 = vtanh.f32 %v568_v5  ;;  %v631_v32 = vor.u32 1.1754944e-38, %v630_v16  ;;  %vm629_vm5 = vcmp.eq.f32.partialorder %v628_v24, 8.507059e+37 }
 0x182   : > { %1023 = vtanh.f32 %v569_v7  ;;  %v616_v35 = vor.u32 1.1754944e-38, %v615_v22  ;;  %vm614_vm6 = vcmp.eq.f32.partialorder %v613_v26, 8.507059e+37 }
 0x185   : > { %v1018_v6 = vpop.eup %1017 }
 0x186   : > { %v1020_v8 = vpop.eup %1019  ;;  %v620_v9 = vmul.f32 %v1018_v6, %v603_v61  ;;  %vm625_vm15 = vweird.f32 %v1018_v6 }
 0x187   : > { %v605_v10 = vmul.f32 %v1020_v8, %v602_v63  ;;  %vm610_vm0 = vweird.f32 %v1020_v8  ;;  %vm626_vm3 = vmor %vm624_vm1, %vm625_vm15  ;;  %v1022_v34 = vpop.eup %1021  ;;  %v690_v63 = vstv %s689_s13 }
 0x188   : > { %v621_v13 = vsub.f32 1.0, %v620_v9  ;;  %vm611_vm4 = vmor %vm609_vm2, %vm610_vm0  ;;  %v1024_v2 = vpop.eup %1023 }
 0x189   : > { %v606_v15 = vsub.f32 1.0, %v605_v10 }
 0x18a   : > { %v622_v23 = vmul.f32 %v1018_v6, %v621_v13  ;;  %v701_v13 = vmul.f32 %v699_v17, %v1134_v21  ;;  %v735_v21 = vstv %s1308_s23 }
 0x18b   : > { %v607_v25 = vmul.f32 %v1020_v8, %v606_v15  ;;  %v725_v15 = vstv %s1302_s19 }
 0x18c   : > { %v623_v30 = vadd.f32 %v1018_v6, %v622_v23 }
 0x18d   : > { %v608_v31 = vadd.f32 %v1020_v8, %v607_v25 }
 0x18e   : > { %v627_v36 = vsel %vm626_vm3, %v1018_v6, %v623_v30 }
 0x18f   : > { %v612_v43 = vsel %vm611_vm4, %v1020_v8, %v608_v31  ;;  %v632_v37 = vsel %vm629_vm5, %v631_v32, %v627_v36  ;;  %v706_v8 = vmul.f32 %v704_v11, %v1193_v44  ;;  %v746_v31 = vstv %s1321_s26 }
 0x190   : > { %v617_v19 = vsel %vm614_vm6, %v616_v35, %v612_v43  ;;  %v1281_v18 = vmul.f32 %v1024_v2, %v632_v37  ;;  %v756_v2 = vstv %s1333_s5 }
 0x191   : > { %v634_v39 = vmul.f32 %v1022_v34, %v617_v19  ;;  %v708_v23 = vadd.f32 %v706_v8, %v701_v13  ;;  %v751_v34 = vstv %s1328_s29  ;;  %v761_v19 = vstv %s1335_s6 }
 0x192   : > { %v642_v55 = vmul.f32 %v1281_v18, %v1199_v46  ;;  %v640_v58 = vmul.f32 %v638_v49, %v1281_v18  ;;  %v713_v44 = vmul.f32 %v711_v38, %v1281_v18 }
 0x193   : > { %v643_v20 = vpack.c.bf16 %v1281_v18, %v634_v39  ;;  %v712_v40 = vmul.f32 %v711_v38, %v634_v39  ;;  %v641_v45 = vmul.f32 %v634_v39, %v1199_v46  ;;  %v639_v51 = vmul.f32 %v638_v49, %v634_v39 }
 0x194   : > { %v715_v25 = vadd.f32 %v713_v44, %v708_v23 }
 0x195   : > { %652 = vmatmul.bf16.vlgmr.msra.gmra.mxu2 %v643_v20  ;;  %v714_v41 = vadd.f32 %v712_v40, %v707_v28 }
 0x218   : > { %v653_v42 = vpop.f32.mrf.mxu2 }
 0x219   : > { %v658_v48 = vmul.f32 %v653_v42, %v1201_v47  ;;  %v772_v42 = vstv %s771_s8 }
 0x21b   : > { %v660_v50 = vadd.f32 %v658_v48, %v641_v45 }
 0x21d   : > { %v665_v52 = vmul.f32 %v664_v27, %v660_v50 }
 0x21f   : > { %v667_v53 = vadd.f32 %v665_v52, %v639_v51 }
 0x220   : > { %v655_v54 = vpop.f32.mrf.mxu2 }
 0x221   : > { %v659_v56 = vmul.f32 %v655_v54, %v1201_v47 }
 0x223   : > { %v661_v57 = vadd.f32 %v659_v56, %v642_v55 }
 0x225   : > { %v666_v59 = vmul.f32 %v664_v27, %v661_v57  ;;  %v669_v60 = vpack.c.bf16 %v661_v57, %v660_v50  ;;  %v777_v50 = vstv %s776_s10 }
 0x227   : > { %v668_v61 = vadd.f32 %v666_v59, %v640_v58  ;;  %678 = vmatmul.bf16.vlgmr.msra.gmra.mxu3 %v669_v60 }
 0x2aa   : > { %v679_v62 = vpop.f32.mrf.mxu3 }
 0x2ab   : > { %v684_v46 = vmul.f32 %v679_v62, %v1201_v47  ;;  %v789_v62 = vld [vmem:[%s246_s12 + $0x8] sm:$0xff] }
 0x2ad   : > { %v686_v0 = vadd.f32 %v684_v46, %v641_v45 }
 0x2af   : > { %v691_v1 = vmul.f32 %v690_v63, %v686_v0 }
 0x2b1   : > { %v693_v3 = vadd.f32 %v691_v1, %v667_v53 }
 0x2b2   : > { %v681_v5 = vpop.f32.mrf.mxu3 }
 0x2b3   : > { %v695_v6 = vadd.f32 %v693_v3, %v1224_v12  ;;  %v685_v7 = vmul.f32 %v681_v5, %v1201_v47  ;;  %v730_v12 = vstv %s1305_s22 }
 0x2b5   : > { %v719_v9 = vmul.f32 %v718_v4, %v695_v6  ;;  %v687_v10 = vadd.f32 %v685_v7, %v642_v55 }
 0x2b7   : > { %v721_v16 = vadd.f32 %v719_v9, %v714_v41  ;;  %v692_v22 = vmul.f32 %v690_v63, %v687_v10 }
 0x2b9   : > { %v694_v47 = vadd.f32 %v692_v22, %v668_v61  ;;  %v726_v11 = vadd.f32 %v725_v15, %v721_v16  ;;  %v788_v61 = vld [vmem:[%s246_s12] sm:$0xff] }
 0x2bb   : > { %v696_v17 = vadd.f32 %v694_v47, %v1228_v14  ;;  %v731_v24 = vmul.f32 %v730_v12, %v726_v11 }
 0x2bd   : > { %v720_v26 = vmul.f32 %v718_v4, %v696_v17  ;;  %v736_v29 = vadd.f32 %v735_v21, %v731_v24 }
 0x2bf   : > { %v722_v30 = vadd.f32 %v720_v26, %v715_v25  ;;  %vm738_vm7 = vcmp.ge.f32.partialorder %v736_v29, 0.0  ;;  %v740_v32 = vmul.f32 0.5, %v736_v29 }
 0x2c1   : > { %v727_v33 = vadd.f32 %v725_v15, %v722_v30  ;;  %v742_v35 = vsel %vm738_vm7, %v736_v29, %v740_v32 }
 0x2c2   : > { %v747_v14 = vmul.f32 %v746_v31, %v742_v35 }
 0x2c3   : > { %v732_v36 = vmul.f32 %v730_v12, %v727_v33 }
 0x2c4   : > { %v752_v43 = vadd.f32 %v751_v34, %v747_v14 }
 0x2c5   : > { %v737_v37 = vadd.f32 %v735_v21, %v732_v36 }
 0x2c6   : > { %v757_v18 = vmul.f32 %v756_v2, %v752_v43 }
 0x2c7   : > { %vm739_vm8 = vcmp.ge.f32.partialorder %v737_v37, 0.0  ;;  %v741_v38 = vmul.f32 0.5, %v737_v37 }
 0x2c8   : > { %v762_v39 = vadd.f32 %v761_v19, %v757_v18 }
 0x2c9   : > { %v743_v28 = vsel %vm739_vm8, %v737_v37, %v741_v38 }
 0x2ca   : > { %v748_v20 = vmul.f32 %v746_v31, %v743_v28  ;;  %vm764_vm9 = vcmp.ge.f32.partialorder %v762_v39, 0.0  ;;  %v766_v40 = vmul.f32 0.5, %v762_v39 }
 0x2cc   : > { %v753_v41 = vadd.f32 %v751_v34, %v748_v20  ;;  %v768_v45 = vsel %vm764_vm9, %v762_v39, %v766_v40 }
 0x2cd   : > { %v773_v49 = vmul.f32 %v772_v42, %v768_v45 }
 0x2ce   : > { %v758_v48 = vmul.f32 %v756_v2, %v753_v41 }
 0x2cf   : > { %v778_v52 = vadd.f32 %v777_v50, %v773_v49 }
 0x2d0   : > { %v763_v27 = vadd.f32 %v761_v19, %v758_v48 }
 0x2d1   : > { %v780_v56 = vadd.f32 %v778_v52, %v742_v35 }
 0x2d2   : > { %vm765_vm10 = vcmp.ge.f32.partialorder %v763_v27, 0.0  ;;  %v767_v51 = vmul.f32 0.5, %v763_v27 }
 0x2d3   : > { %v784_v59 = vmul.f32 0.5, %v780_v56  ;;  %vm782_vm12 = vcmp.ge.f32.partialorder %v780_v56, 0.0 }
 0x2d4   : > { %v769_v53 = vsel %vm765_vm10, %v763_v27, %v767_v51 }
 0x2d5   : > { %v774_v54 = vmul.f32 %v772_v42, %v769_v53  ;;  %v786_v46 = vsel %vm782_vm12, %v780_v56, %v784_v59 }
 0x2d7   : > { %v779_v55 = vadd.f32 %v777_v50, %v774_v54 }
 0x2d9   : > { %v781_v57 = vadd.f32 %v779_v55, %v743_v28 }
 0x2db   : > { %vm783_vm11 = vcmp.ge.f32.partialorder %v781_v57, 0.0  ;;  %v785_v58 = vmul.f32 0.5, %v781_v57 }
 0x2dd   : > { %v787_v60 = vsel %vm783_vm11, %v781_v57, %v785_v58 }
 0x2de   : > { %811 = vmatpush.msrb.mxu0 %v787_v60  ;;  %980 = vmatpush.msrb.mxu1 %v787_v60 }
 0x2e0   : > { %812 = vmatpush.msrb.mxu0 %v786_v46  ;;  %981 = vmatpush.msrb.mxu1 %v786_v46 }
 0x2e1   : > { %964 = vmatmul.msk.f32.vlgmr.msrb.gmra.mxu0 %vm790_vm13, %v788_v61  ;;  %965 = vmatmul.msk.f32.vlgmr.msrb.gmra.mxu1 %vm790_vm13, %v789_v62 }
 0x35e   : > { %v814_v63 = vpop.f32.mrf.mxu0  ;;  %v817_v0 = vpop.f32.mrf.mxu1 }
 0x35f   : > { %820 = vst [vmem:[%s251_s16] sm:$0xff] %v814_v63 }
 0x360   : > { %821 = vst [vmem:[%s251_s16 + $0x8] sm:$0xff] %v817_v0 }
 0x361 PF: > { %s15_s15 = sadd.s32 1, %s1050_s15  }
 0x362   : > { %p12_p7 = scmp.ge.s32.totalorder %s15_s15, 5  }
 0x364   :  { %14 = sbr.rel (!%p12_p7) target bundleno = 1 (0x1), region = 77 }
 0x369   :  { %843 = vsyncpa [#allocation3], 1 }
 0x36a   :  { %845 = vsyncpa [#allocation3 + $0x1], 1 }

</bundles_post_ra>
